<compile_context>
chip_gen: v7x
topology: tpu7x:2x2x1
jax: 0.10.0
libtpu: 0.0.40
codegen_flags: <defaults>
</compile_context>

<pallas_src>
import jax
import jax.numpy as jnp
from jax.experimental import pallas as pl
from jax.experimental.pallas import tpu as pltpu

ALPHA = 0.25
GAMMA = 2.0            # hardcoded as gamma == 2 -> explicit square below
LANES = 128            # lane width
MAX_ROW_TILE = 1024    # 1024x128 f32 = 512 KiB per pipeline buffer
NUM_SPLITS = 2         # leading "parallel" axis (2 TensorCores on v7x)


def _round_up(x, m):
    return ((x + m - 1) // m) * m


def _focal_loss_kernel(x_ref, t_ref, o_ref, acc_ref):
    j = pl.program_id(1)

    @pl.when(j == 0)
    def _():
        acc_ref[...] = jnp.zeros_like(acc_ref)

    p = x_ref[...].astype(jnp.float32)
    t = t_ref[...].astype(jnp.float32)

    # F.binary_cross_entropy clamps each log term at -100 (PyTorch semantics).
    log_p = jnp.maximum(jnp.log(p), -100.0)
    log_1mp = jnp.maximum(jnp.log(1.0 - p), -100.0)
    bce = -(t * log_p + (1.0 - t) * log_1mp)

    probs = jnp.where(t == 1.0, p, 1.0 - p)
    q = 1.0 - probs
    loss = (ALPHA * bce) * (q * q)   # explicit square instead of ** 2.0

    # Fold (row_tile, 128) into the vreg-shaped (8, 128) accumulator with
    # plain VPU adds; no cross-lane (XLU) reduction in the hot loop.
    acc_ref[...] += loss.reshape(-1, 8, LANES).sum(axis=0)

    @pl.when(j == pl.num_programs(1) - 1)
    def _():
        o_ref[...] = acc_ref[...]


def focal_loss(inputs, targets):
    """Mean-reduced focal loss. inputs/targets: same shape, inputs in (0,1)."""
    assert inputs.shape == targets.shape
    total = inputs.size

    # Choose tiling: split rows across NUM_SPLITS, tile each split's rows.
    rows = -(-total // LANES)
    rows_per_split = -(-rows // NUM_SPLITS)
    row_tile = min(MAX_ROW_TILE, _round_up(max(rows_per_split, 1), 8))
    steps = -(-rows_per_split // row_tile)
    rows_padded = NUM_SPLITS * steps * row_tile
    padded = rows_padded * LANES

    # Zero padding contributes exactly zero loss (p=0, t=0 -> bce=0, q=0).
    x2d = jnp.pad(inputs.reshape(-1), (0, padded - total)).reshape(
        rows_padded, LANES)
    t2d = jnp.pad(targets.reshape(-1), (0, padded - total)).reshape(
        rows_padded, LANES)

    in_map = lambda c, j: (c * steps + j, 0)

    partials = pl.pallas_call(
        _focal_loss_kernel,
        out_shape=jax.ShapeDtypeStruct((NUM_SPLITS * 8, LANES), jnp.float32),
        grid_spec=pltpu.PrefetchScalarGridSpec(
            num_scalar_prefetch=0,
            grid=(NUM_SPLITS, steps),
            in_specs=[
                pl.BlockSpec((row_tile, LANES), in_map),
                pl.BlockSpec((row_tile, LANES), in_map),
            ],
            out_specs=pl.BlockSpec((8, LANES), lambda c, j: (c, 0)),
            scratch_shapes=[pltpu.VMEM((8, LANES), jnp.float32)],
        ),
        compiler_params=pltpu.CompilerParams(
            dimension_semantics=("parallel", "arbitrary"),
            vmem_limit_bytes=32 << 20,
        ),
    )(x2d, t2d)

    # Tiny epilogue in plain JAX: combine per-core partial slabs, divide by
    # the true (unpadded) element count.
    return jnp.sum(partials) / jnp.float32(total)


if __name__ == "__main__":
    key = jax.random.PRNGKey(0)
    k1, k2 = jax.random.split(key)

    # inputs: probabilities in (0,1), targets: binary {0,1} floats (NCHW)
    shape = (2, 4, 16, 16)
    logits = jax.random.normal(k1, shape, dtype=jnp.float32)
    inputs = jax.nn.sigmoid(logits)
    targets = (jax.random.uniform(k2, shape) > 0.5).astype(jnp.float32)

    result = focal_loss(inputs, targets)
    jax.block_until_ready(result)

    # reference check in plain JAX (mirrors the PyTorch module)
    log_p = jnp.maximum(jnp.log(inputs), -100.0)
    log_1mp = jnp.maximum(jnp.log(1.0 - inputs), -100.0)
    bce = -(targets * log_p + (1.0 - targets) * log_1mp)
    probs = jnp.where(targets == 1.0, inputs, 1.0 - inputs)
    ref = jnp.mean(ALPHA * (1.0 - probs) ** GAMMA * bce)
    assert jnp.allclose(result, ref, rtol=1e-5, atol=1e-6), (result, ref)

    print("KERNEL_OK")
</pallas_src>

<mosaic_0001>
module attributes {stable_mosaic.version = 11 : i64} {
  func.func @_focal_loss_kernel(%arg0: i32, %arg1: i32, %arg2: memref<8x128xf32, #tpu.memory_space<vmem>>, %arg3: memref<8x128xf32, #tpu.memory_space<vmem>>, %arg4: memref<8x128xf32, #tpu.memory_space<vmem>>, %arg5: memref<8x128xf32, #tpu.memory_space<vmem>>) attributes {dimension_semantics = [#tpu.dimension_semantics<parallel>, #tpu.dimension_semantics<arbitrary>], iteration_bounds = array<i64: 2, 1>, scalar_prefetch = 0 : i64, scratch_operands = 1 : i64, tpu.core_type = #tpu.core_type<tc>, window_params = [{transform_indices = @transform_0, window_bounds = array<i64: 8, 128>}, {transform_indices = @transform_1, window_bounds = array<i64: 8, 128>}, {transform_indices = @transform_2, window_bounds = array<i64: 8, 128>}]} {
    %c0_i32 = arith.constant 0 : i32
    %0 = arith.cmpi eq, %arg1, %c0_i32 : i32
    %1 = arith.extui %0 : i1 to i32
    %c0_i32_0 = arith.constant 0 : i32
    %2 = arith.cmpi ne, %1, %c0_i32_0 : i32
    scf.if %2 {
      %cst_19 = arith.constant 0.000000e+00 : f32
      %39 = vector.broadcast %cst_19 : f32 to vector<8x128xf32>
      %c0_20 = arith.constant 0 : index
      %c0_21 = arith.constant 0 : index
      %40 = vector.load %arg5[%c0_20, %c0_21] : memref<8x128xf32, #tpu.memory_space<vmem>>, vector<8x128xf32>
      tpu.vector_store %arg5[%c0_20, %c0_21], %39 {strides = array<i32>} : memref<8x128xf32, #tpu.memory_space<vmem>>, vector<8x128xf32>,
    } else {
    }
    %c0 = arith.constant 0 : index
    %c0_1 = arith.constant 0 : index
    %3 = vector.load %arg2[%c0, %c0_1] : memref<8x128xf32, #tpu.memory_space<vmem>>, vector<8x128xf32>
    %c0_2 = arith.constant 0 : index
    %c0_3 = arith.constant 0 : index
    %4 = vector.load %arg3[%c0_2, %c0_3] : memref<8x128xf32, #tpu.memory_space<vmem>>, vector<8x128xf32>
    %5 = math.log %3 : vector<8x128xf32>
    %cst = arith.constant -1.000000e+02 : f32
    %6 = vector.broadcast %cst : f32 to vector<8x128xf32>
    %7 = arith.maximumf %5, %6 : vector<8x128xf32>
    %cst_4 = arith.constant 1.000000e+00 : f32
    %8 = vector.broadcast %cst_4 : f32 to vector<8x128xf32>
    %9 = arith.subf %8, %3 : vector<8x128xf32>
    %10 = math.log %9 : vector<8x128xf32>
    %cst_5 = arith.constant -1.000000e+02 : f32
    %11 = vector.broadcast %cst_5 : f32 to vector<8x128xf32>
    %12 = arith.maximumf %10, %11 : vector<8x128xf32>
    %13 = arith.mulf %4, %7 : vector<8x128xf32>
    %cst_6 = arith.constant 1.000000e+00 : f32
    %14 = vector.broadcast %cst_6 : f32 to vector<8x128xf32>
    %15 = arith.subf %14, %4 : vector<8x128xf32>
    %16 = arith.mulf %15, %12 : vector<8x128xf32>
    %17 = arith.addf %13, %16 : vector<8x128xf32>
    %cst_7 = arith.constant 0.000000e+00 : f32
    %18 = vector.broadcast %cst_7 : f32 to vector<8x128xf32>
    %19 = arith.subf %18, %17 : vector<8x128xf32>
    %cst_8 = arith.constant 1.000000e+00 : f32
    %20 = vector.broadcast %cst_8 : f32 to vector<8x128xf32>
    %21 = arith.cmpf oeq, %4, %20 : vector<8x128xf32>
    %cst_9 = arith.constant 1.000000e+00 : f32
    %22 = vector.broadcast %cst_9 : f32 to vector<8x128xf32>
    %23 = arith.subf %22, %3 : vector<8x128xf32>
    %24 = arith.select %21, %3, %23 : vector<8x128xi1>, vector<8x128xf32>
    %cst_10 = arith.constant 1.000000e+00 : f32
    %25 = vector.broadcast %cst_10 : f32 to vector<8x128xf32>
    %26 = arith.subf %25, %24 : vector<8x128xf32>
    %cst_11 = arith.constant 2.500000e-01 : f32
    %27 = vector.broadcast %cst_11 : f32 to vector<8x128xf32>
    %28 = arith.mulf %27, %19 : vector<8x128xf32>
    %29 = arith.mulf %26, %26 : vector<8x128xf32>
    %30 = arith.mulf %28, %29 : vector<8x128xf32>
    %c0_12 = arith.constant 0 : index
    %c0_13 = arith.constant 0 : index
    %31 = vector.load %arg5[%c0_12, %c0_13] : memref<8x128xf32, #tpu.memory_space<vmem>>, vector<8x128xf32>
    %32 = vector.shape_cast %30 : vector<8x128xf32> to vector<1x8x128xf32>
    %cst_14 = arith.constant dense<0.000000e+00> : vector<8x128xf32>
    %33 = vector.multi_reduction <add>, %32, %cst_14 [0] : vector<1x8x128xf32> to vector<8x128xf32>
    %34 = arith.addf %31, %33 : vector<8x128xf32>
    %c0_15 = arith.constant 0 : index
    %c0_16 = arith.constant 0 : index
    %35 = vector.load %arg5[%c0_15, %c0_16] : memref<8x128xf32, #tpu.memory_space<vmem>>, vector<8x128xf32>
    tpu.vector_store %arg5[%c0_15, %c0_16], %34 {strides = array<i32>} : memref<8x128xf32, #tpu.memory_space<vmem>>, vector<8x128xf32>,
    %c0_i32_17 = arith.constant 0 : i32
    %36 = arith.cmpi eq, %arg1, %c0_i32_17 : i32
    %37 = arith.extui %36 : i1 to i32
    %c0_i32_18 = arith.constant 0 : i32
    %38 = arith.cmpi ne, %37, %c0_i32_18 : i32
    scf.if %38 {
      %c0_19 = arith.constant 0 : index
      %c0_20 = arith.constant 0 : index
      %39 = vector.load %arg5[%c0_19, %c0_20] : memref<8x128xf32, #tpu.memory_space<vmem>>, vector<8x128xf32>
      %c0_21 = arith.constant 0 : index
      %c0_22 = arith.constant 0 : index
      %40 = vector.load %arg4[%c0_21, %c0_22] : memref<8x128xf32, #tpu.memory_space<vmem>>, vector<8x128xf32>
      tpu.vector_store %arg4[%c0_21, %c0_22], %39 {strides = array<i32>} : memref<8x128xf32, #tpu.memory_space<vmem>>, vector<8x128xf32>,
    } else {
    }
    return
  }
  func.func @transform_0(%arg0: i32, %arg1: i32) -> (i32, i32) {
    %c1_i32 = arith.constant 1 : i32
    %0 = arith.muli %arg0, %c1_i32 : i32
    %1 = arith.addi %0, %arg1 : i32
    %c0_i32 = arith.constant 0 : i32
    %c0_i32_0 = arith.constant 0 : i32
    return %1, %c0_i32 : i32, i32
  }
  func.func @transform_1(%arg0: i32, %arg1: i32) -> (i32, i32) {
    %c1_i32 = arith.constant 1 : i32
    %0 = arith.muli %arg0, %c1_i32 : i32
    %1 = arith.addi %0, %arg1 : i32
    %c0_i32 = arith.constant 0 : i32
    %c0_i32_0 = arith.constant 0 : i32
    return %1, %c0_i32 : i32, i32
  }
  func.func @transform_2(%arg0: i32, %arg1: i32) -> (i32, i32) {
    %c0_i32 = arith.constant 0 : i32
    %c0_i32_0 = arith.constant 0 : i32
    return %arg0, %c0_i32 : i32, i32
  }
}

</mosaic_0001>

<bundles_post_ra>
// kernel: tpu_custom_call.1
= control target key start
LH: loop header
LB: loop body
LE: loop exit
PB: predicated region body
PF: predicated region fallthrough
CT: control target
= control target key end

     0   :  { %7 = vsyncpa [#allocation4], 0  ;;  %s845_s0 = inlined_call_operand.hbm [shape: f32[16,128], index: 0, kind: input, shape index: {}]   ;;  %s846_s1 = inlined_call_operand.hbm [shape: f32[16,128], index: 1, kind: input, shape index: {}]   ;;  %s847_s2 = inlined_call_operand.hbm [shape: f32[16,128], index: 2, kind: output, shape index: {}]  }
   0x1   :  { %9 = vsyncpa [#allocation4 + $0x1], 0 }
   0x2   :  { %10 = vsyncpa [#allocation7], 0 }
   0x3   :  { %12 = vsyncpa [#allocation7 + $0x1], 0 }
   0x4   :  { %13 = vsyncpa [#allocation5], 0 }
   0x5   :  { %15 = vsyncpa [#allocation5 + $0x1], 0  ;;  %s620_s9 = smov 0   ;;  %s622_s10 = smov 0  }
   0x6   :  { %s624_s11 = smov 0   ;;  %s626_s12 = smov 0  }
   0x7   :  { %s628_s13 = smov 0   ;;  %s630_s14 = smov 0  }
   0x8 LB: > { %s367_s15 = sadd.s32 4294967295, %s600_s14   ;;  %s368_s16 = sadd.s32 4294967294, %s600_s14   ;;  %s600_s14 = sphi %s630_s14, %s21_s14   ;;  %s596_s13 = sphi %s628_s13, %s867_s13   ;;  %s592_s12 = sphi %s626_s12, %s866_s12   ;;  %s588_s11 = sphi %s624_s11, %s865_s11   ;;  %s584_s10 = sphi %s622_s10, %s864_s10   ;;  %s580_s9 = sphi %s620_s9, %s863_s9  }
   0x9   : > { %s33_s17 = sadd.s32 1, %s596_s13  ;;  %s42_s18 = sadd.s32 1, %s588_s11 }
   0xa   : > { %p35_p0 = scmp.ge.s32.totalorder %s33_s17, 2  ;;  %p49_p1 = scmp.ne.s32.totalorder %s588_s11, %s584_s10 }
   0xb   : > { %p50_p2 = scmp.eq.s32.totalorder %s600_s14, 0  ;;  %p55_p3 = scmp.ne.s32.totalorder %s584_s10, %s580_s9 }
   0xc   : > { %s869_s17 = smov (%p35_p0, %s33_s17), 0  ;;  %p56_p5 = scmp.eq.s32.totalorder %s367_s15, 0 }
   0xd   : > { %p661_p4 = por %p50_p2, %p49_p1  ;;  %s39_s20 = ssub.s32 %s596_s13, %s869_s17 }
   0xe   : > { %p107_p6 = scmp.eq.s32.totalorder %s367_s15, 1  ;;  %p40_p7 = scmp.eq.s32.totalorder %s39_s20, 0 }
   0xf   : > { %p667_p8 = por %p56_p5, %p55_p3  ;;  %p113_p10 = scmp.eq.s32.totalorder %s368_s16, 1 }
  0x10   : > { %p671_p9 = por %p107_p6, %p49_p1  ;;  %p400_p13 = scmp.lt.s32.totalorder %s600_s14, 2 }
  0x11   : > { %s851_s21 = scalar_select %p667_p8, 1, 0 }
  0x12   : > { %s852_s22 = scalar_select %p671_p9, 1, 0 }
  0x13   : > { %s676_s23 = scalar_select %p40_p7, %s588_s11, %s42_s18  }
  0x14   : > { %p678_p11 = por %p113_p10, %p55_p3  ;;  %s685_s25 = sand.u32 1, %s588_s11  }
  0x15   : > { %s371_s26 = sshll.u32 %s685_s25, 3  ;;  %s372_s27 = sshll.u32 %s596_s13, 7 }
  0x16   : > { %s853_s24 = scalar_select %p678_p11, 1, 0 }
  0x17   : > { %s694_s30 = scalar_lea.hbm %s845_s0, %s372_s27  ;;  %s137_s3 = scalar_lea.vmem [#allocation3], %s371_s26 }
  0x18   : > { %s145_s4 = sshll.u32 %s137_s3, 4  ;;  %p702_p0 = pnand %p400_p13, %p661_p4  ;;  %s698_s4 = int_to_ptr.vmem [resolvable:$true] %s145_s4 }
  0x19   : > { %s134_s6 = scalar_lea.sflag [#allocation4], %s685_s25  ;;  %s454_s7 = scalar_lea.hbm %s694_s30, 128 }
  0x1a   : > { %p455_p3 = scmp.ne.s32.totalorder %s694_s30, %s454_s7  ;;  %p456_p5 = pneg %p702_p0 }
  0x1b   : > { %s459_s16 = scalar_lea.hbm %s845_s0, 256  ;;  %p460_p4 = scmp.lt.u32.totalorder %s694_s30, %s845_s0 }
  0x1c   : > { %p457_p6 = pnand %p456_p5, %p455_p3  ;;  %p461_p10 = scmp.lt.u32.totalorder %s459_s16, %s454_s7 }
  0x1d   : > { %p463_p12 = scmp.lt.u32.totalorder %s454_s7, %s694_s30 }
  0x1e   : > { %p458_p7 = pneg %p457_p6  ;;  %p462_p13 = por %p461_p10, %p460_p4 }
  0x20   : > { %p464_p1 = por %p463_p12, %p462_p13 }
  0x22   : > { %p465_p2 = pnand %p464_p1, %p458_p7 }
  0x24   : > { %468 = shalt.err (!%p465_p2)
}
  0x25   : > { %s469_s20 = scalar_lea.vmem %s698_s4, 128  ;;  %s602_s28 = smov [#allocation3]  }
  0x26   : > { %p470_p3 = scmp.ne.s32.totalorder %s698_s4, %s469_s20  ;;  %s474_s29 = sshll.u32 %s602_s28, 4  ;;  %s475_s29 = int_to_ptr.vmem [resolvable:$false] %s474_s29 }
  0x27   : > { %s476_s3 = scalar_lea.vmem %s475_s29, 256  ;;  %p477_p9 = scmp.lt.s32.totalorder %s698_s4, %s475_s29 }
  0x28   : > { %p472_p6 = pnand %p470_p3, %p456_p5  ;;  %p478_p4 = scmp.lt.s32.totalorder %s476_s3, %s469_s20 }
  0x2a   : > { %p473_p11 = pneg %p472_p6  ;;  %p479_p10 = por %p478_p4, %p477_p9 }
  0x2c   : > { %p480_p12 = pnand %p479_p10, %p473_p11 }
  0x2e   : > { %483 = shalt.err (!%p480_p12)
}
  0x2f   : > { %392 = dma.hbm_to_vmem [thread:$0]  (!%p702_p0), %s694_s30, 128, %s698_s4, %s134_s6  }
  0x30   : > { %p855_p1 = scmp.lt.s32.totalorder %s600_s14, 3  ;;  %p856_p2 = scmp.ge.s32.totalorder %s600_s14, 1 }
  0x31   : > { %s747_s16 = scalar_lea.hbm %s846_s1, %s372_s27  ;;  %s156_s18 = scalar_lea.vmem [#allocation6], %s371_s26 }
  0x32   : > { %p738_p7 = pnand %p856_p2, %p855_p1  ;;  %s164_s19 = sshll.u32 %s156_s18, 4  ;;  %s165_s19 = int_to_ptr.vmem [resolvable:$true] %s164_s19 }
  0x33   : > { %s153_s30 = scalar_lea.sflag [#allocation7], %s685_s25  ;;  %s484_s4 = scalar_lea.hbm %s747_s16, 128 }
  0x34   : > { %s857_s7 = scalar_select %p738_p7, 1, 0 }
  0x35   : > { %p485_p9 = scmp.ne.s32.totalorder %s747_s16, %s484_s4  ;;  %s489_s27 = scalar_lea.hbm %s846_s1, 256 }
  0x36   : > { %p490_p3 = scmp.lt.u32.totalorder %s747_s16, %s846_s1  ;;  %p491_p6 = scmp.lt.u32.totalorder %s489_s27, %s484_s4 }
  0x37   : > { %p487_p11 = pnand %p485_p9, %p456_p5  ;;  %p493_p10 = scmp.lt.u32.totalorder %s484_s4, %s747_s16 }
  0x38   : > { %p492_p4 = por %p491_p6, %p490_p3 }
  0x39   : > { %p488_p13 = pneg %p487_p11 }
  0x3a   : > { %p494_p12 = por %p493_p10, %p492_p4 }
  0x3c   : > { %p495_p1 = pnand %p494_p12, %p488_p13 }
  0x3e   : > { %498 = shalt.err (!%p495_p1)
}
  0x3f   : > { %s499_s25 = scalar_lea.vmem %s165_s19, 128  ;;  %s603_s26 = smov [#allocation6]  }
  0x40   : > { %p500_p2 = scmp.ne.s32.totalorder %s165_s19, %s499_s25  ;;  %s504_s3 = sshll.u32 %s603_s26, 4  ;;  %s505_s3 = int_to_ptr.vmem [resolvable:$false] %s504_s3 }
  0x41   : > { %s506_s8 = scalar_lea.vmem %s505_s3, 256  ;;  %p507_p8 = scmp.lt.s32.totalorder %s165_s19, %s505_s3 }
  0x42   : > { %p502_p9 = pnand %p500_p2, %p456_p5  ;;  %p508_p7 = scmp.lt.s32.totalorder %s506_s8, %s499_s25 }
  0x44   : > { %p503_p11 = pneg %p502_p9  ;;  %p509_p3 = por %p508_p7, %p507_p8 }
  0x46   : > { %p510_p6 = pnand %p509_p3, %p503_p11 }
  0x48   : > { %513 = shalt.err (!%p510_p6)
}
  0x49   : > { %395 = dma.hbm_to_vmem [thread:$0]  (!%p702_p0), %s747_s16, 128, %s165_s19, %s153_s30  }
  0x4a   : > { %p858_p13 = scmp.ne.s32.totalorder %s857_s7, 0 }
  0x4b   : > { %s774_s15 = sand.u32 (!%p858_p13), 1, %s584_s10   ;;  %p859_p8 = scmp.ne.s32.totalorder (!%p858_p13), %s851_s21, 0 }
  0x4c   : > { %173 = sbr.rel (%p858_p13) target bundleno = 128 (0x80), region = 28  ;;  %s777_s18 = sshll.u32 (!%p858_p13), %s774_s15, 3 }
  0x4d   : > { %s176_s4 = scalar_lea.sflag (!%p858_p13), [#allocation4], %s774_s15  ;;  %s179_s6 = scalar_lea.vmem (!%p858_p13), [#allocation3], %s777_s18 }
  0x53   : > { %567 = dma.done.wait (%p859_p8), %s176_s4, 128  }
  0x54   : > { %569 = vsyncadd (%p859_p8), %s176_s4, 4294967168  ;;  %s185_s5 = scalar_lea.sflag [#allocation7], %s774_s15  ;;  %s188_s7 = scalar_lea.vmem [#allocation6], %s777_s18 }
  0x55   : > { %571 = dma.done.wait (%p859_p8), %s185_s5, 128  }
  0x56   : > { %573 = vsyncadd (%p859_p8), %s185_s5, 4294967168  ;;  %v221_v0 = vld [vmem:[%s179_s6] sm:$0xff]  ;;  %v222_v3 = vld [vmem:[%s188_s7] sm:$0xff]  ;;  %s213_s21 = scalar_lea.vmem [#allocation8], %s777_s18  ;;  %s380_s19 = sshll.u32 %s592_s12, 7 }
  0x57   : > { %450 = vlog2.f32 %v221_v0  ;;  %v226_v1 = vsub.f32 1.0, %v221_v0  ;;  %vm235_vm0 = vcmp.eq.f32.partialorder %v222_v3, 1.0  ;;  %v231_v8 = vsub.f32 1.0, %v222_v3  ;;  %s264_s16 = sshll.u32 %s213_s21, 4  ;;  %s798_s27 = scalar_lea.hbm %s847_s2, %s380_s19  ;;  %s793_s16 = int_to_ptr.vmem [resolvable:$true] %s264_s16 }
  0x58   : > { %s251_s28 = scalar_lea.sflag [#allocation5], %s774_s15  ;;  %s514_s29 = scalar_lea.vmem %s793_s16, 128 }
  0x59   : > { %452 = vlog2.f32 %v226_v1  ;;  %v236_v9 = vsel %vm235_vm0, %v221_v0, %v226_v1  ;;  %p515_p0 = scmp.ne.s32.totalorder %s793_s16, %s514_s29  ;;  %p860_p5 = scmp.ne.s32.totalorder %s852_s22, 0 }
  0x5a   : > { %v237_v13 = vsub.f32 1.0, %v236_v9  ;;  %s604_s12 = smov [#allocation8]  }
  0x5b   : > { %p516_p7 = pnand %p515_p0, %p860_p5  ;;  %s518_s25 = sshll.u32 %s604_s12, 4  ;;  %s519_s25 = int_to_ptr.vmem [resolvable:$false] %s518_s25 }
  0x5c   : > { %v239_v16 = vmul.f32 %v237_v13, %v237_v13  ;;  %s520_s26 = scalar_lea.vmem %s519_s25, 256  ;;  %p521_p10 = scmp.lt.s32.totalorder %s793_s16, %s519_s25 }
  0x5d   : > { %p517_p4 = pneg %p516_p7  ;;  %p522_p12 = scmp.lt.s32.totalorder %s520_s26, %s514_s29 }
  0x5f   : > { %p523_p1 = por %p522_p12, %p521_p10 }
  0x61   : > { %v451_v2 = vpop.eup %450  ;;  %p524_p2 = pnand %p523_p1, %p517_p4 }
  0x62   : > { %v224_v4 = vmul.f32 0.6931472, %v451_v2 }
  0x63   : > { %v453_v5 = vpop.eup %452 }
  0x64   : > { %v225_v6 = vmax.f32 %v224_v4, -100.0  ;;  %v228_v7 = vmul.f32 0.6931472, %v453_v5 }
  0x66   : > { %v229_v10 = vmax.f32 %v228_v7, -100.0  ;;  %v230_v11 = vmul.f32 %v225_v6, %v222_v3 }
  0x68   : > { %v232_v12 = vmul.f32 %v231_v8, %v229_v10 }
  0x6a   : > { %v233_v14 = vadd.f32 %v232_v12, %v230_v11 }
  0x6c   : > { %v234_v15 = vsub.f32 0.0, %v233_v14 }
  0x6e   : > { %v238_v17 = vmul.f32 0.25, %v234_v15 }
  0x70   : > { %v240_v18 = vmul.f32 %v239_v16, %v238_v17 }
  0x72   : > { %249 = vst [vmem:[%s213_s21] sm:$0xff] %v240_v18 }
  0x73   : > { %527 = shalt.err (!%p524_p2)
}
  0x74   : > { %s528_s3 = scalar_lea.hbm %s798_s27, 128  ;;  %s532_s18 = scalar_lea.hbm %s847_s2, 256 }
  0x75   : > { %p529_p9 = scmp.ne.s32.totalorder %s798_s27, %s528_s3  ;;  %p533_p6 = scmp.lt.u32.totalorder %s798_s27, %s847_s2 }
  0x76   : > { %p534_p13 = scmp.lt.u32.totalorder %s532_s18, %s528_s3  ;;  %p536_p0 = scmp.lt.u32.totalorder %s528_s3, %s798_s27 }
  0x77   : > { %p530_p11 = pnand %p529_p9, %p860_p5 }
  0x78   : > { %p535_p8 = por %p534_p13, %p533_p6 }
  0x79   : > { %p531_p3 = pneg %p530_p11 }
  0x7a   : > { %p537_p7 = por %p536_p0, %p535_p8 }
  0x7c   : > { %p538_p4 = pnand %p537_p7, %p531_p3 }
  0x7e   : > { %541 = shalt.err (!%p538_p4)
}
  0x7f   : > { %387 = dma.vmem_to_hbm [thread:$0]  (%p860_p5), %s793_s16, 128, %s798_s27, %s251_s28  }
  0x80 PF: > { %s276_s5 = sand.u32 1, %s580_s9   ;;  %p861_p10 = scmp.ne.s32.totalorder %s853_s24, 0 }
  0x81   : > { %p862_p12 = scmp.ge.s32.totalorder %s600_s14, 2  ;;  %s277_s7 = scalar_lea.sflag [#allocation5], %s276_s5 }
  0x83   : > { %p397_p1 = pnand %p862_p12, %p861_p10 }
  0x85   : > { %575 = dma.done.wait (!%p397_p1), %s277_s7, 128  }
  0x86   : > { %577 = vsyncadd (!%p397_p1), %s277_s7, 4294967168  ;;  %s21_s14 = sadd.s32 1, %s600_s14   ;;  %s863_s9 = smov %s584_s10 }
  0x87   : > { %p18_p2 = scmp.ge.s32.totalorder %s21_s14, 4   ;;  %s864_s10 = smov %s588_s11 }
  0x88   : > { %s865_s11 = smov %s676_s23  ;;  %s866_s12 = smov %s596_s13 }
  0x89   : > { %s867_s13 = smov %s869_s17  ;;  %20 = sbr.rel (!%p18_p2) target bundleno = 8 (0x8), region = 94 }
  0x90   :  { %282 = vsyncpa [#allocation4], 1 }
  0x91   :  { %284 = vsyncpa [#allocation4 + $0x1], 1 }
  0x92   :  { %285 = vsyncpa [#allocation7], 1 }
  0x93   :  { %287 = vsyncpa [#allocation7 + $0x1], 1 }
  0x94   :  { %288 = vsyncpa [#allocation5], 1 }
  0x95   :  { %290 = vsyncpa [#allocation5 + $0x1], 1 }

</bundles_post_ra>
